<compile_context>
chip_gen: v5e
topology: v5e:2x2
jax: 0.10.0
libtpu: 0.0.40
codegen_flags: <defaults>
</compile_context>

<pallas_src>
import functools
import math

import jax
import jax.numpy as jnp
from jax import lax
from jax.experimental import pallas as pl
from jax.experimental.pallas import tpu as pltpu


def mha_block_kernel(x_ref, w1_ref, b1_ref, wq2_ref, wk2_ref, wv2_ref,
                     b2_ref, wo_ref, bo_ref, o_ref, *, num_heads):
    # x_ref:  (TB, L, D)   bf16
    # w1_ref: (D, 3E)      bf16   (block q/k/v weights, pre-transposed + packed)
    # b1_ref: (1, 3E)      f32
    # wq2/wk2/wv2_ref: (E, E) bf16 (MHA in-proj, pre-transposed + split)
    # b2_ref: (1, 3E)      f32
    # wo_ref: (E, E)       bf16   (MHA out-proj, pre-transposed)
    # bo_ref: (1, E)       f32
    # o_ref:  (TB, L, E)   f32
    TB, L, D = x_ref.shape
    E = wo_ref.shape[0]
    hd = E // num_heads
    scale = 1.0 / math.sqrt(hd)

    # Fold the TB batch elements into the matmul M dimension.
    x = x_ref[...].reshape(TB * L, D)                                  # bf16

    # Stage 1: the block's q/k/v Linears fused into a single (D, 3E) matmul.
    qkv1 = jnp.dot(x, w1_ref[...],
                   preferred_element_type=jnp.float32) + b1_ref[...]  # (TB*L, 3E) f32
    q1 = qkv1[:, 0 * E:1 * E].astype(jnp.bfloat16)
    k1 = qkv1[:, 1 * E:2 * E].astype(jnp.bfloat16)
    v1 = qkv1[:, 2 * E:3 * E].astype(jnp.bfloat16)

    # Stage 2: nn.MultiheadAttention in-projection (f32 accumulation).
    q2 = jnp.dot(q1, wq2_ref[...],
                 preferred_element_type=jnp.float32) + b2_ref[:, 0 * E:1 * E]
    k2 = jnp.dot(k1, wk2_ref[...],
                 preferred_element_type=jnp.float32) + b2_ref[:, 1 * E:2 * E]
    v2 = jnp.dot(v1, wv2_ref[...],
                 preferred_element_type=jnp.float32) + b2_ref[:, 2 * E:3 * E]
    q2 = (q2 * scale).astype(jnp.bfloat16)
    k2 = k2.astype(jnp.bfloat16)
    v2 = v2.astype(jnp.bfloat16)

    # Scaled-dot-product attention per (batch-in-tile, head).  Static unroll:
    # TB and num_heads are small compile-time constants.
    batch_outs = []
    for b in range(TB):
        r0, r1 = b * L, (b + 1) * L
        head_outs = []
        for h in range(num_heads):
            c0, c1 = h * hd, (h + 1) * hd
            qh = q2[r0:r1, c0:c1]                                      # (L, hd)
            kh = k2[r0:r1, c0:c1]
            vh = v2[r0:r1, c0:c1]
            # qh @ kh.T without materializing a transpose.
            s = lax.dot_general(qh, kh, (((1,), (1,)), ((), ())),
                                preferred_element_type=jnp.float32)    # (L, L)
            s = s - jnp.max(s, axis=-1, keepdims=True)
            p = jnp.exp(s)
            p = p * pl.reciprocal(jnp.sum(p, axis=-1, keepdims=True),
                                  approx=True)
            head_outs.append(jnp.dot(p.astype(jnp.bfloat16), vh,
                                     preferred_element_type=jnp.float32))
        batch_outs.append(jnp.concatenate(head_outs, axis=-1))         # (L, E)
    attn = jnp.concatenate(batch_outs, axis=0)                         # (TB*L, E)

    # MHA out-projection, done once on all TB*L rows.
    out = jnp.dot(attn.astype(jnp.bfloat16), wo_ref[...],
                  preferred_element_type=jnp.float32) + bo_ref[...]    # (TB*L, E)
    o_ref[...] = out.reshape(TB, L, E).astype(o_ref.dtype)


def _pick_tb(batch, seq_len):
    """Largest divisor of `batch` s.t. TB*L <= 256, keeping >=2 grid steps."""
    best = 1
    for cand in range(1, batch + 1):
        if batch % cand:
            continue
        if cand * seq_len > 256:
            break
        if batch // cand >= 2 or (cand == batch == 1):
            best = cand
    return best


def mhablock_forward(x, wq, bq, wk, bk, wv, bv, w_in, b_in, wo, bo, *, num_heads):
    """x: (L, B, D) f32.  Returns (L, B, E) f32, matching MHABlock.forward."""
    L, B, D = x.shape
    E = wq.shape[0]
    assert E % num_heads == 0
    out_dtype = x.dtype

    # --- one-time wrapper prep (amortized over the whole batch grid) -------
    # Block q/k/v Linears: pack into one pre-transposed (D, 3E) bf16 matrix.
    w1_t = jnp.concatenate([wq, wk, wv], axis=0).T.astype(jnp.bfloat16)  # (D, 3E)
    b1 = jnp.concatenate([bq, bk, bv]).reshape(1, 3 * E).astype(jnp.float32)
    # MHA in-projection: split q/k/v, pre-transpose, bf16.
    wq2, wk2, wv2 = jnp.split(w_in, 3, axis=0)
    wq2_t = wq2.T.astype(jnp.bfloat16)
    wk2_t = wk2.T.astype(jnp.bfloat16)
    wv2_t = wv2.T.astype(jnp.bfloat16)
    b2 = b_in.reshape(1, 3 * E).astype(jnp.float32)
    # MHA out-projection.
    wo_t = wo.T.astype(jnp.bfloat16)
    bo2 = bo.reshape(1, E).astype(jnp.float32)

    # Batch-major, lane-dense layout for the kernel: (B, L, D) bf16.
    x_bld = jnp.transpose(x, (1, 0, 2)).astype(jnp.bfloat16)

    TB = _pick_tb(B, L)
    grid = (B // TB,)

    kernel = functools.partial(mha_block_kernel, num_heads=num_heads)

    out_ble = pl.pallas_call(
        kernel,
        out_shape=jax.ShapeDtypeStruct((B, L, E), out_dtype),
        grid_spec=pltpu.PrefetchScalarGridSpec(
            num_scalar_prefetch=0,
            grid=grid,
            in_specs=[
                pl.BlockSpec((TB, L, D), lambda i: (i, 0, 0)),   # x slab
                pl.BlockSpec((D, 3 * E), lambda i: (0, 0)),      # block qkv weight
                pl.BlockSpec((1, 3 * E), lambda i: (0, 0)),      # block qkv bias
                pl.BlockSpec((E, E), lambda i: (0, 0)),          # in-proj Wq.T
                pl.BlockSpec((E, E), lambda i: (0, 0)),          # in-proj Wk.T
                pl.BlockSpec((E, E), lambda i: (0, 0)),          # in-proj Wv.T
                pl.BlockSpec((1, 3 * E), lambda i: (0, 0)),      # in-proj bias
                pl.BlockSpec((E, E), lambda i: (0, 0)),          # out-proj W.T
                pl.BlockSpec((1, E), lambda i: (0, 0)),          # out-proj bias
            ],
            out_specs=pl.BlockSpec((TB, L, E), lambda i: (i, 0, 0)),
        ),
        compiler_params=pltpu.CompilerParams(
            dimension_semantics=("parallel",)),
    )(x_bld, w1_t, b1, wq2_t, wk2_t, wv2_t, b2, wo_t, bo2)

    return jnp.transpose(out_ble, (1, 0, 2))                     # (L, B, E)


def mhablock_reference(x, wq, bq, wk, bk, wv, bv, w_in, b_in, wo, bo, *, num_heads):
    """Pure-JAX f32 reference mirroring the PyTorch forward."""
    L, B, D = x.shape
    E = wq.shape[0]
    hd = E // num_heads
    q = x @ wq.T + bq
    k = x @ wk.T + bk
    v = x @ wv.T + bv
    wq2, wk2, wv2 = jnp.split(w_in, 3, axis=0)
    bq2, bk2, bv2 = jnp.split(b_in, 3)
    q = q @ wq2.T + bq2
    k = k @ wk2.T + bk2
    v = v @ wv2.T + bv2

    def split_heads(t):                       # (L,B,E) -> (B,H,L,hd)
        return t.reshape(L, B, num_heads, hd).transpose(1, 2, 0, 3)

    qh, kh, vh = map(split_heads, (q, k, v))
    scores = jnp.einsum("bhld,bhmd->bhlm", qh, kh) / jnp.sqrt(jnp.float32(hd))
    p = jax.nn.softmax(scores, axis=-1)
    oh = jnp.einsum("bhlm,bhmd->bhld", p, vh)                    # (B,H,L,hd)
    o = oh.transpose(2, 0, 1, 3).reshape(L, B, E)
    return o @ wo.T + bo


if __name__ == "__main__":
    # Small shapes consistent with the module: seq_len L, batch B (batch_first
    # =False layout), input_dim = qkv_dim = 32, 4 heads (head_dim = 8).
    L, B, D, E, H = 16, 2, 32, 32, 4

    key = jax.random.PRNGKey(0)
    keys = jax.random.split(key, 11)

    def linear_params(kw, kb, out_dim, in_dim):
        bound = 1.0 / math.sqrt(in_dim)
        w = jax.random.uniform(kw, (out_dim, in_dim), minval=-bound,
                               maxval=bound, dtype=jnp.float32)
        b = jax.random.uniform(kb, (out_dim,), minval=-bound,
                               maxval=bound, dtype=jnp.float32)
        return w, b

    x = jax.random.normal(keys[0], (L, B, D), dtype=jnp.float32)
    wq, bq = linear_params(keys[1], keys[2], E, D)
    wk, bk = linear_params(keys[3], keys[4], E, D)
    wv, bv = linear_params(keys[5], keys[6], E, D)
    bound = 1.0 / math.sqrt(E)
    w_in = jax.random.uniform(keys[7], (3 * E, E), minval=-bound,
                              maxval=bound, dtype=jnp.float32)
    b_in = jax.random.uniform(keys[8], (3 * E,), minval=-bound,
                              maxval=bound, dtype=jnp.float32)
    wo, bo = linear_params(keys[9], keys[10], E, E)

    out = mhablock_forward(x, wq, bq, wk, bk, wv, bv, w_in, b_in, wo, bo,
                           num_heads=H)
    out = jax.block_until_ready(out)

    ref = mhablock_reference(x, wq, bq, wk, bk, wv, bv, w_in, b_in, wo, bo,
                             num_heads=H)
    assert out.shape == (L, B, E), out.shape
    max_err = jnp.max(jnp.abs(out - ref))
    # bf16 matmul inputs + approx softmax reciprocal -> loosened tolerance.
    assert jnp.allclose(out, ref, atol=2e-2, rtol=2e-2), f"max err {max_err}"
    print("KERNEL_OK")
</pallas_src>

<mosaic_0001>
module attributes {stable_mosaic.version = 11 : i64} {
  func.func @mha_block_kernel(%arg0: i32, %arg1: memref<1x16x32xbf16, #tpu.memory_space<vmem>>, %arg2: memref<32x96xbf16, #tpu.memory_space<vmem>>, %arg3: memref<1x96xf32, #tpu.memory_space<vmem>>, %arg4: memref<32x32xbf16, #tpu.memory_space<vmem>>, %arg5: memref<32x32xbf16, #tpu.memory_space<vmem>>, %arg6: memref<32x32xbf16, #tpu.memory_space<vmem>>, %arg7: memref<1x96xf32, #tpu.memory_space<vmem>>, %arg8: memref<32x32xbf16, #tpu.memory_space<vmem>>, %arg9: memref<1x32xf32, #tpu.memory_space<vmem>>, %arg10: memref<1x16x32xf32, #tpu.memory_space<vmem>>) attributes {dimension_semantics = [#tpu.dimension_semantics<parallel>], iteration_bounds = array<i64: 2>, scalar_prefetch = 0 : i64, scratch_operands = 0 : i64, tpu.core_type = #tpu.core_type<tc>, window_params = [{transform_indices = @transform_0, window_bounds = array<i64: 1, 16, 32>}, {pipeline_mode = #tpu.pipeline_mode<synchronous>, transform_indices = @transform_1, window_bounds = array<i64: 32, 96>}, {pipeline_mode = #tpu.pipeline_mode<synchronous>, transform_indices = @transform_2, window_bounds = array<i64: 1, 96>}, {pipeline_mode = #tpu.pipeline_mode<synchronous>, transform_indices = @transform_3, window_bounds = array<i64: 32, 32>}, {pipeline_mode = #tpu.pipeline_mode<synchronous>, transform_indices = @transform_4, window_bounds = array<i64: 32, 32>}, {pipeline_mode = #tpu.pipeline_mode<synchronous>, transform_indices = @transform_5, window_bounds = array<i64: 32, 32>}, {pipeline_mode = #tpu.pipeline_mode<synchronous>, transform_indices = @transform_6, window_bounds = array<i64: 1, 96>}, {pipeline_mode = #tpu.pipeline_mode<synchronous>, transform_indices = @transform_7, window_bounds = array<i64: 32, 32>}, {pipeline_mode = #tpu.pipeline_mode<synchronous>, transform_indices = @transform_8, window_bounds = array<i64: 1, 32>}, {transform_indices = @transform_9, window_bounds = array<i64: 1, 16, 32>}]} {
    %c0 = arith.constant 0 : index
    %c0_0 = arith.constant 0 : index
    %c0_1 = arith.constant 0 : index
    %0 = vector.load %arg1[%c0, %c0_0, %c0_1] : memref<1x16x32xbf16, #tpu.memory_space<vmem>>, vector<1x16x32xbf16>
    %1 = vector.shape_cast %0 : vector<1x16x32xbf16> to vector<16x32xbf16>
    %c0_2 = arith.constant 0 : index
    %c0_3 = arith.constant 0 : index
    %2 = vector.load %arg2[%c0_2, %c0_3] : memref<32x96xbf16, #tpu.memory_space<vmem>>, vector<32x96xbf16>
    %cst = arith.constant dense<0.000000e+00> : vector<16x96xf32>
    %3 = tpu.matmul %1, %2, %cst {dimension_numbers = #tpu.dot_dimension_numbers<[1], [0], [0], [1], [0, 0, 1, 1], [], []>} : vector<16x32xbf16>, vector<32x96xbf16>, vector<16x96xf32> -> vector<16x96xf32>
    %c0_4 = arith.constant 0 : index
    %c0_5 = arith.constant 0 : index
    %4 = vector.load %arg3[%c0_4, %c0_5] : memref<1x96xf32, #tpu.memory_space<vmem>>, vector<1x96xf32>
    %5 = vector.broadcast %4 : vector<1x96xf32> to vector<16x96xf32>
    %6 = arith.addf %3, %5 : vector<16x96xf32>
    %7 = vector.extract_strided_slice %6 {offsets = [0, 0], sizes = [16, 32], strides = [1, 1]} : vector<16x96xf32> to vector<16x32xf32>
    %8 = arith.truncf %7 : vector<16x32xf32> to vector<16x32xbf16>
    %9 = vector.extract_strided_slice %6 {offsets = [0, 32], sizes = [16, 32], strides = [1, 1]} : vector<16x96xf32> to vector<16x32xf32>
    %10 = arith.truncf %9 : vector<16x32xf32> to vector<16x32xbf16>
    %11 = vector.extract_strided_slice %6 {offsets = [0, 64], sizes = [16, 32], strides = [1, 1]} : vector<16x96xf32> to vector<16x32xf32>
    %12 = arith.truncf %11 : vector<16x32xf32> to vector<16x32xbf16>
    %c0_6 = arith.constant 0 : index
    %c0_7 = arith.constant 0 : index
    %13 = vector.load %arg4[%c0_6, %c0_7] : memref<32x32xbf16, #tpu.memory_space<vmem>>, vector<32x32xbf16>
    %cst_8 = arith.constant dense<0.000000e+00> : vector<16x32xf32>
    %14 = tpu.matmul %8, %13, %cst_8 {dimension_numbers = #tpu.dot_dimension_numbers<[1], [0], [0], [1], [0, 0, 1, 1], [], []>} : vector<16x32xbf16>, vector<32x32xbf16>, vector<16x32xf32> -> vector<16x32xf32>
    %c0_9 = arith.constant 0 : index
    %c0_10 = arith.constant 0 : index
    %15 = vector.load %arg7[%c0_9, %c0_10] : memref<1x96xf32, #tpu.memory_space<vmem>>, vector<1x32xf32>
    %16 = vector.broadcast %15 : vector<1x32xf32> to vector<16x32xf32>
    %17 = arith.addf %14, %16 : vector<16x32xf32>
    %c0_11 = arith.constant 0 : index
    %c0_12 = arith.constant 0 : index
    %18 = vector.load %arg5[%c0_11, %c0_12] : memref<32x32xbf16, #tpu.memory_space<vmem>>, vector<32x32xbf16>
    %cst_13 = arith.constant dense<0.000000e+00> : vector<16x32xf32>
    %19 = tpu.matmul %10, %18, %cst_13 {dimension_numbers = #tpu.dot_dimension_numbers<[1], [0], [0], [1], [0, 0, 1, 1], [], []>} : vector<16x32xbf16>, vector<32x32xbf16>, vector<16x32xf32> -> vector<16x32xf32>
    %c0_14 = arith.constant 0 : index
    %c32 = arith.constant 32 : index
    %20 = vector.load %arg7[%c0_14, %c32] : memref<1x96xf32, #tpu.memory_space<vmem>>, vector<1x32xf32>
    %21 = vector.broadcast %20 : vector<1x32xf32> to vector<16x32xf32>
    %22 = arith.addf %19, %21 : vector<16x32xf32>
    %c0_15 = arith.constant 0 : index
    %c0_16 = arith.constant 0 : index
    %23 = vector.load %arg6[%c0_15, %c0_16] : memref<32x32xbf16, #tpu.memory_space<vmem>>, vector<32x32xbf16>
    %cst_17 = arith.constant dense<0.000000e+00> : vector<16x32xf32>
    %24 = tpu.matmul %12, %23, %cst_17 {dimension_numbers = #tpu.dot_dimension_numbers<[1], [0], [0], [1], [0, 0, 1, 1], [], []>} : vector<16x32xbf16>, vector<32x32xbf16>, vector<16x32xf32> -> vector<16x32xf32>
    %c0_18 = arith.constant 0 : index
    %c64 = arith.constant 64 : index
    %25 = vector.load %arg7[%c0_18, %c64] : memref<1x96xf32, #tpu.memory_space<vmem>>, vector<1x32xf32>
    %26 = vector.broadcast %25 : vector<1x32xf32> to vector<16x32xf32>
    %27 = arith.addf %24, %26 : vector<16x32xf32>
    %cst_19 = arith.constant 0.353553385 : f32
    %28 = vector.broadcast %cst_19 : f32 to vector<16x32xf32>
    %29 = arith.mulf %17, %28 : vector<16x32xf32>
    %30 = arith.truncf %29 : vector<16x32xf32> to vector<16x32xbf16>
    %31 = arith.truncf %22 : vector<16x32xf32> to vector<16x32xbf16>
    %32 = arith.truncf %27 : vector<16x32xf32> to vector<16x32xbf16>
    %33 = vector.extract_strided_slice %30 {offsets = [0, 0], sizes = [16, 8], strides = [1, 1]} : vector<16x32xbf16> to vector<16x8xbf16>
    %34 = vector.extract_strided_slice %31 {offsets = [0, 0], sizes = [16, 8], strides = [1, 1]} : vector<16x32xbf16> to vector<16x8xbf16>
    %35 = vector.extract_strided_slice %32 {offsets = [0, 0], sizes = [16, 8], strides = [1, 1]} : vector<16x32xbf16> to vector<16x8xbf16>
    %cst_20 = arith.constant dense<0.000000e+00> : vector<16x16xf32>
    %36 = tpu.matmul %33, %34, %cst_20 {dimension_numbers = #tpu.dot_dimension_numbers<[1], [1], [0], [0], [0, 0, 1, 0], [], []>} : vector<16x8xbf16>, vector<16x8xbf16>, vector<16x16xf32> -> vector<16x16xf32>
    %cst_21 = arith.constant dense<0xFF800000> : vector<16xf32>
    %37 = vector.multi_reduction <maximumf>, %36, %cst_21 [1] : vector<16x16xf32> to vector<16xf32>
    %38 = vector.shape_cast %37 : vector<16xf32> to vector<16x1xf32>
    %39 = vector.broadcast %38 : vector<16x1xf32> to vector<16x16xf32>
    %40 = arith.subf %36, %39 : vector<16x16xf32>
    %41 = math.exp %40 : vector<16x16xf32>
    %cst_22 = arith.constant dense<0.000000e+00> : vector<16xf32>
    %42 = vector.multi_reduction <add>, %41, %cst_22 [1] : vector<16x16xf32> to vector<16xf32>
    %43 = vector.shape_cast %42 : vector<16xf32> to vector<16x1xf32>
    %44 = tpu.reciprocal %43 {approx = true} : vector<16x1xf32> -> vector<16x1xf32>
    %45 = vector.broadcast %44 : vector<16x1xf32> to vector<16x16xf32>
    %46 = arith.mulf %41, %45 : vector<16x16xf32>
    %47 = arith.truncf %46 : vector<16x16xf32> to vector<16x16xbf16>
    %cst_23 = arith.constant dense<0.000000e+00> : vector<16x8xf32>
    %48 = tpu.matmul %47, %35, %cst_23 {dimension_numbers = #tpu.dot_dimension_numbers<[1], [0], [0], [1], [0, 0, 1, 1], [], []>} : vector<16x16xbf16>, vector<16x8xbf16>, vector<16x8xf32> -> vector<16x8xf32>
    %49 = vector.extract_strided_slice %30 {offsets = [0, 8], sizes = [16, 8], strides = [1, 1]} : vector<16x32xbf16> to vector<16x8xbf16>
    %50 = vector.extract_strided_slice %31 {offsets = [0, 8], sizes = [16, 8], strides = [1, 1]} : vector<16x32xbf16> to vector<16x8xbf16>
    %51 = vector.extract_strided_slice %32 {offsets = [0, 8], sizes = [16, 8], strides = [1, 1]} : vector<16x32xbf16> to vector<16x8xbf16>
    %cst_24 = arith.constant dense<0.000000e+00> : vector<16x16xf32>
    %52 = tpu.matmul %49, %50, %cst_24 {dimension_numbers = #tpu.dot_dimension_numbers<[1], [1], [0], [0], [0, 0, 1, 0], [], []>} : vector<16x8xbf16>, vector<16x8xbf16>, vector<16x16xf32> -> vector<16x16xf32>
    %cst_25 = arith.constant dense<0xFF800000> : vector<16xf32>
    %53 = vector.multi_reduction <maximumf>, %52, %cst_25 [1] : vector<16x16xf32> to vector<16xf32>
    %54 = vector.shape_cast %53 : vector<16xf32> to vector<16x1xf32>
    %55 = vector.broadcast %54 : vector<16x1xf32> to vector<16x16xf32>
    %56 = arith.subf %52, %55 : vector<16x16xf32>
    %57 = math.exp %56 : vector<16x16xf32>
    %cst_26 = arith.constant dense<0.000000e+00> : vector<16xf32>
    %58 = vector.multi_reduction <add>, %57, %cst_26 [1] : vector<16x16xf32> to vector<16xf32>
    %59 = vector.shape_cast %58 : vector<16xf32> to vector<16x1xf32>
    %60 = tpu.reciprocal %59 {approx = true} : vector<16x1xf32> -> vector<16x1xf32>
    %61 = vector.broadcast %60 : vector<16x1xf32> to vector<16x16xf32>
    %62 = arith.mulf %57, %61 : vector<16x16xf32>
    %63 = arith.truncf %62 : vector<16x16xf32> to vector<16x16xbf16>
    %cst_27 = arith.constant dense<0.000000e+00> : vector<16x8xf32>
    %64 = tpu.matmul %63, %51, %cst_27 {dimension_numbers = #tpu.dot_dimension_numbers<[1], [0], [0], [1], [0, 0, 1, 1], [], []>} : vector<16x16xbf16>, vector<16x8xbf16>, vector<16x8xf32> -> vector<16x8xf32>
    %65 = vector.extract_strided_slice %30 {offsets = [0, 16], sizes = [16, 8], strides = [1, 1]} : vector<16x32xbf16> to vector<16x8xbf16>
    %66 = vector.extract_strided_slice %31 {offsets = [0, 16], sizes = [16, 8], strides = [1, 1]} : vector<16x32xbf16> to vector<16x8xbf16>
    %67 = vector.extract_strided_slice %32 {offsets = [0, 16], sizes = [16, 8], strides = [1, 1]} : vector<16x32xbf16> to vector<16x8xbf16>
    %cst_28 = arith.constant dense<0.000000e+00> : vector<16x16xf32>
    %68 = tpu.matmul %65, %66, %cst_28 {dimension_numbers = #tpu.dot_dimension_numbers<[1], [1], [0], [0], [0, 0, 1, 0], [], []>} : vector<16x8xbf16>, vector<16x8xbf16>, vector<16x16xf32> -> vector<16x16xf32>
    %cst_29 = arith.constant dense<0xFF800000> : vector<16xf32>
    %69 = vector.multi_reduction <maximumf>, %68, %cst_29 [1] : vector<16x16xf32> to vector<16xf32>
    %70 = vector.shape_cast %69 : vector<16xf32> to vector<16x1xf32>
    %71 = vector.broadcast %70 : vector<16x1xf32> to vector<16x16xf32>
    %72 = arith.subf %68, %71 : vector<16x16xf32>
    %73 = math.exp %72 : vector<16x16xf32>
    %cst_30 = arith.constant dense<0.000000e+00> : vector<16xf32>
    %74 = vector.multi_reduction <add>, %73, %cst_30 [1] : vector<16x16xf32> to vector<16xf32>
    %75 = vector.shape_cast %74 : vector<16xf32> to vector<16x1xf32>
    %76 = tpu.reciprocal %75 {approx = true} : vector<16x1xf32> -> vector<16x1xf32>
    %77 = vector.broadcast %76 : vector<16x1xf32> to vector<16x16xf32>
    %78 = arith.mulf %73, %77 : vector<16x16xf32>
    %79 = arith.truncf %78 : vector<16x16xf32> to vector<16x16xbf16>
    %cst_31 = arith.constant dense<0.000000e+00> : vector<16x8xf32>
    %80 = tpu.matmul %79, %67, %cst_31 {dimension_numbers = #tpu.dot_dimension_numbers<[1], [0], [0], [1], [0, 0, 1, 1], [], []>} : vector<16x16xbf16>, vector<16x8xbf16>, vector<16x8xf32> -> vector<16x8xf32>
    %81 = vector.extract_strided_slice %30 {offsets = [0, 24], sizes = [16, 8], strides = [1, 1]} : vector<16x32xbf16> to vector<16x8xbf16>
    %82 = vector.extract_strided_slice %31 {offsets = [0, 24], sizes = [16, 8], strides = [1, 1]} : vector<16x32xbf16> to vector<16x8xbf16>
    %83 = vector.extract_strided_slice %32 {offsets = [0, 24], sizes = [16, 8], strides = [1, 1]} : vector<16x32xbf16> to vector<16x8xbf16>
    %cst_32 = arith.constant dense<0.000000e+00> : vector<16x16xf32>
    %84 = tpu.matmul %81, %82, %cst_32 {dimension_numbers = #tpu.dot_dimension_numbers<[1], [1], [0], [0], [0, 0, 1, 0], [], []>} : vector<16x8xbf16>, vector<16x8xbf16>, vector<16x16xf32> -> vector<16x16xf32>
    %cst_33 = arith.constant dense<0xFF800000> : vector<16xf32>
    %85 = vector.multi_reduction <maximumf>, %84, %cst_33 [1] : vector<16x16xf32> to vector<16xf32>
    %86 = vector.shape_cast %85 : vector<16xf32> to vector<16x1xf32>
    %87 = vector.broadcast %86 : vector<16x1xf32> to vector<16x16xf32>
    %88 = arith.subf %84, %87 : vector<16x16xf32>
    %89 = math.exp %88 : vector<16x16xf32>
    %cst_34 = arith.constant dense<0.000000e+00> : vector<16xf32>
    %90 = vector.multi_reduction <add>, %89, %cst_34 [1] : vector<16x16xf32> to vector<16xf32>
    %91 = vector.shape_cast %90 : vector<16xf32> to vector<16x1xf32>
    %92 = tpu.reciprocal %91 {approx = true} : vector<16x1xf32> -> vector<16x1xf32>
    %93 = vector.broadcast %92 : vector<16x1xf32> to vector<16x16xf32>
    %94 = arith.mulf %89, %93 : vector<16x16xf32>
    %95 = arith.truncf %94 : vector<16x16xf32> to vector<16x16xbf16>
    %cst_35 = arith.constant dense<0.000000e+00> : vector<16x8xf32>
    %96 = tpu.matmul %95, %83, %cst_35 {dimension_numbers = #tpu.dot_dimension_numbers<[1], [0], [0], [1], [0, 0, 1, 1], [], []>} : vector<16x16xbf16>, vector<16x8xbf16>, vector<16x8xf32> -> vector<16x8xf32>
    %97 = tpu.concatenate %48, %64, %80, %96 in 1 : vector<16x8xf32>, vector<16x8xf32>, vector<16x8xf32>, vector<16x8xf32> -> vector<16x32xf32>
    %98 = arith.truncf %97 : vector<16x32xf32> to vector<16x32xbf16>
    %c0_36 = arith.constant 0 : index
    %c0_37 = arith.constant 0 : index
    %99 = vector.load %arg8[%c0_36, %c0_37] : memref<32x32xbf16, #tpu.memory_space<vmem>>, vector<32x32xbf16>
    %cst_38 = arith.constant dense<0.000000e+00> : vector<16x32xf32>
    %100 = tpu.matmul %98, %99, %cst_38 {dimension_numbers = #tpu.dot_dimension_numbers<[1], [0], [0], [1], [0, 0, 1, 1], [], []>} : vector<16x32xbf16>, vector<32x32xbf16>, vector<16x32xf32> -> vector<16x32xf32>
    %c0_39 = arith.constant 0 : index
    %c0_40 = arith.constant 0 : index
    %101 = vector.load %arg9[%c0_39, %c0_40] : memref<1x32xf32, #tpu.memory_space<vmem>>, vector<1x32xf32>
    %102 = vector.broadcast %101 : vector<1x32xf32> to vector<16x32xf32>
    %103 = arith.addf %100, %102 : vector<16x32xf32>
    %104 = vector.shape_cast %103 : vector<16x32xf32> to vector<1x16x32xf32>
    %c0_41 = arith.constant 0 : index
    %c0_42 = arith.constant 0 : index
    %c0_43 = arith.constant 0 : index
    %105 = vector.load %arg10[%c0_41, %c0_42, %c0_43] : memref<1x16x32xf32, #tpu.memory_space<vmem>>, vector<1x16x32xf32>
    tpu.vector_store %arg10[%c0_41, %c0_42, %c0_43], %104 {strides = array<i32>} : memref<1x16x32xf32, #tpu.memory_space<vmem>>, vector<1x16x32xf32>,
    return
  }
  func.func @transform_0(%arg0: i32) -> (i32, i32, i32) {
    %c0_i32 = arith.constant 0 : i32
    %c0_i32_0 = arith.constant 0 : i32
    %c0_i32_1 = arith.constant 0 : i32
    return %arg0, %c0_i32, %c0_i32_0 : i32, i32, i32
  }
  func.func @transform_1(%arg0: i32) -> (i32, i32) {
    %c0_i32 = arith.constant 0 : i32
    %c0_i32_0 = arith.constant 0 : i32
    %c0_i32_1 = arith.constant 0 : i32
    return %c0_i32, %c0_i32_0 : i32, i32
  }
  func.func @transform_2(%arg0: i32) -> (i32, i32) {
    %c0_i32 = arith.constant 0 : i32
    %c0_i32_0 = arith.constant 0 : i32
    %c0_i32_1 = arith.constant 0 : i32
    return %c0_i32, %c0_i32_0 : i32, i32
  }
  func.func @transform_3(%arg0: i32) -> (i32, i32) {
    %c0_i32 = arith.constant 0 : i32
    %c0_i32_0 = arith.constant 0 : i32
    %c0_i32_1 = arith.constant 0 : i32
    return %c0_i32, %c0_i32_0 : i32, i32
  }
  func.func @transform_4(%arg0: i32) -> (i32, i32) {
    %c0_i32 = arith.constant 0 : i32
    %c0_i32_0 = arith.constant 0 : i32
    %c0_i32_1 = arith.constant 0 : i32
    return %c0_i32, %c0_i32_0 : i32, i32
  }
  func.func @transform_5(%arg0: i32) -> (i32, i32) {
    %c0_i32 = arith.constant 0 : i32
    %c0_i32_0 = arith.constant 0 : i32
    %c0_i32_1 = arith.constant 0 : i32
    return %c0_i32, %c0_i32_0 : i32, i32
  }
  func.func @transform_6(%arg0: i32) -> (i32, i32) {
    %c0_i32 = arith.constant 0 : i32
    %c0_i32_0 = arith.constant 0 : i32
    %c0_i32_1 = arith.constant 0 : i32
    return %c0_i32, %c0_i32_0 : i32, i32
  }
  func.func @transform_7(%arg0: i32) -> (i32, i32) {
    %c0_i32 = arith.constant 0 : i32
    %c0_i32_0 = arith.constant 0 : i32
    %c0_i32_1 = arith.constant 0 : i32
    return %c0_i32, %c0_i32_0 : i32, i32
  }
  func.func @transform_8(%arg0: i32) -> (i32, i32) {
    %c0_i32 = arith.constant 0 : i32
    %c0_i32_0 = arith.constant 0 : i32
    %c0_i32_1 = arith.constant 0 : i32
    return %c0_i32, %c0_i32_0 : i32, i32
  }
  func.func @transform_9(%arg0: i32) -> (i32, i32, i32) {
    %c0_i32 = arith.constant 0 : i32
    %c0_i32_0 = arith.constant 0 : i32
    %c0_i32_1 = arith.constant 0 : i32
    return %arg0, %c0_i32, %c0_i32_0 : i32, i32, i32
  }
}

</mosaic_0001>

<bundles_post_ra>
// kernel: tpu_custom_call.1
= control target key start
LH: loop header
LB: loop body
LE: loop exit
PB: predicated region body
PF: predicated region fallthrough
CT: control target
= control target key end

     0   :  { %s1934_s0 = inlined_call_operand.hbm [shape: bf16[2,16,32], index: 0, kind: input, shape index: {}]   ;;  %s1935_s1 = inlined_call_operand.hbm [shape: bf16[32,96], index: 1, kind: input, shape index: {}]   ;;  %s1936_s2 = inlined_call_operand.vmem [shape: f32[1,96], index: 2, kind: input, shape index: {}]   ;;  %s1937_s3 = inlined_call_operand.hbm [shape: bf16[32,32], index: 3, kind: input, shape index: {}]   ;;  %s1938_s4 = inlined_call_operand.hbm [shape: bf16[32,32], index: 4, kind: input, shape index: {}]   ;;  %s1939_s5 = inlined_call_operand.hbm [shape: bf16[32,32], index: 5, kind: input, shape index: {}]   ;;  %s1940_s6 = inlined_call_operand.vmem [shape: f32[1,96], index: 6, kind: input, shape index: {}]   ;;  %s1941_s7 = inlined_call_operand.hbm [shape: bf16[32,32], index: 7, kind: input, shape index: {}]   ;;  %s1942_s8 = inlined_call_operand.vmem [shape: f32[1,32], index: 8, kind: input, shape index: {}]   ;;  %s1943_s9 = inlined_call_operand.hbm [shape: f32[2,16,32], index: 9, kind: output, shape index: {}]  }
   0x1   :  { %1946 = sst [smem:[#allocation19_spill]] %s1935_s1 }
   0x2   :  { %1947 = sst [smem:[#allocation20_spill]] %s1937_s3 }
   0x3   :  { %1948 = sst [smem:[#allocation21_spill]] %s1938_s4 }
   0x4   :  { %14 = vsyncpa [#allocation3], 0 }
   0x5   :  { %16 = vsyncpa [#allocation3 + $0x1], 0 }
   0x6   :  { %17 = vsyncpa [#allocation6], 0 }
   0x7   :  { %18 = vsyncpa [#allocation9], 0 }
   0x8   :  { %19 = vsyncpa [#allocation12], 0 }
   0x9   :  { %20 = vsyncpa [#allocation4], 0 }
   0xa   :  { %22 = vsyncpa [#allocation4 + $0x1], 0  ;;  %s1670_s30 = smov 0   ;;  %s1672_s10 = smov 0  }
   0xb   :  { %s1674_s11 = smov 0   ;;  %s1676_s12 = smov 0  }
   0xc LB: > { %s1949_s1 = sld [smem:[#allocation19_spill]]  ;;  %s1694_s16 = sadd.s32 4294967295, %s1602_s12   ;;  %s1602_s12 = sphi %s1676_s12, %s1964_s12   ;;  %s1598_s11 = sphi %s1674_s11, %s1963_s11   ;;  %s1594_s10 = sphi %s1672_s10, %s1962_s10   ;;  %s1590_s30 = sphi %s1670_s30, %s1961_s30  }
   0xd   : > { %p1093_p0 = scmp.ge.s32.totalorder %s1602_s12, 1  ;;  %p49_p1 = scmp.eq.s32.totalorder %s1694_s16, 0 }
   0xe   : > { %p253_p2 = scmp.lt.s32.totalorder %s1602_s12, 3  ;;  %s1604_s18 = smov [#allocation5]  }
   0xf   : > { %s266_s19 = sshll.u32 %s1604_s18, 4  ;;  %s1951_s4 = sld [smem:[#allocation21_spill]]  ;;  %s267_s19 = int_to_ptr.vmem [resolvable:$true] %s266_s19 }
  0x10   : > { %p1699_p3 = pnand %p1093_p0, %p253_p2  ;;  %s1953_s3 = sld [smem:[#allocation20_spill]] }
  0x11   : > { %s1605_s27 = smov [#allocation8]   ;;  %s1944_s29 = smov 64  }
  0x12   : > { %s264_s15 = sshll.u32 %s1949_s1, 4  ;;  %p1210_p4 = pneg %p1699_p3  ;;  %s265_s15 = int_to_ptr.hbm [resolvable:$true] %s264_s15 }
  0x13   : > { %s297_s28 = sshll.u32 %s1605_s27, 4  ;;  %s1945_s13 = smov 4   ;;  %s298_s28 = int_to_ptr.vmem [resolvable:$true] %s297_s28 }
  0x14   : > { %p1711_p6 = pnand %p1210_p4, %p49_p1  ;;  %s309_s20 = sshll.u32 %s1939_s5, 4  ;;  %s310_s20 = int_to_ptr.hbm [resolvable:$true] %s309_s20 }
  0x15   : > { %s295_s22 = sshll.u32 %s1951_s4, 4  ;;  %s1608_s21 = smov [#allocation7]   ;;  %s296_s22 = int_to_ptr.hbm [resolvable:$true] %s295_s22 }
  0x16   : > { %s281_s26 = sshll.u32 %s1953_s3, 4  ;;  %s283_s24 = sshll.u32 %s1608_s21, 4  ;;  %s282_s26 = int_to_ptr.hbm [resolvable:$true] %s281_s26  ;;  %s284_s24 = int_to_ptr.vmem [resolvable:$true] %s283_s24 }
  0x17   : > { %1213 = dma.hbm_to_vmem [thread:$0]  (!%p1711_p6), %s265_s15, 256, %s267_s19, [#allocation6], %s1944_s29, %s1944_s29, %s1945_s13  }
  0x18   : > { %1219 = dma.hbm_to_vmem [thread:$0]  (!%p1711_p6), %s296_s22, 256, %s298_s28, [#allocation9], %s1944_s29, %s1944_s29, %s1945_s13  }
  0x19   : > { %1216 = dma.hbm_to_vmem [thread:$0]  (!%p1711_p6), %s282_s26, 256, %s284_s24, [#allocation6], %s1944_s29, %s1944_s29, %s1945_s13  }
  0x1a   : > { %s1609_s15 = smov [#allocation10]   ;;  %s326_s27 = sshll.u32 %s1941_s7, 4  ;;  %s327_s27 = int_to_ptr.hbm [resolvable:$true] %s326_s27 }
  0x1b   : > { %s311_s19 = sshll.u32 %s1609_s15, 4  ;;  %s1610_s26 = smov [#allocation11]   ;;  %s312_s19 = int_to_ptr.vmem [resolvable:$true] %s311_s19 }
  0x1c   : > { %1222 = dma.hbm_to_vmem [thread:$0]  (!%p1711_p6), %s310_s20, 256, %s312_s19, [#allocation9], %s1944_s29, %s1944_s29, %s1945_s13  }
  0x1d   : > { %s328_s28 = sshll.u32 %s1610_s26, 4  ;;  %s1092_s14 = sadd.s32 4294967294, %s1602_s12   ;;  %s329_s28 = int_to_ptr.vmem [resolvable:$true] %s328_s28 }
  0x1e   : > { %1225 = dma.hbm_to_vmem [thread:$0]  (!%p1711_p6), %s327_s27, 256, %s329_s28, [#allocation12], %s1944_s29, %s1944_s29, %s1945_s13  }
  0x1f   : > { %s1751_s18 = sadd.s32 1, %s1602_s12   ;;  %s35_s21 = sadd.s32 1, %s1598_s11 }
  0x20   : > { %s32_s24 = ssub.s32 %s1602_s12, %s1751_s18  ;;  %p42_p7 = scmp.ne.s32.totalorder %s1598_s11, %s1594_s10 }
  0x21   : > { %p33_p8 = scmp.eq.s32.totalorder %s32_s24, 0  ;;  %p43_p9 = scmp.eq.s32.totalorder %s1602_s12, 0 }
  0x22   : > { %p48_p10 = scmp.ne.s32.totalorder %s1594_s10, %s1590_s30  ;;  %p240_p11 = scmp.eq.s32.totalorder %s1694_s16, 1 }
  0x23   : > { %s1763_s20 = scalar_select %p33_p8, %s1598_s11, %s35_s21  }
  0x24   : > { %p1767_p12 = por %p49_p1, %p48_p10  ;;  %p1771_p13 = por %p240_p11, %p42_p7 }
  0x25   : > { %p246_p0 = scmp.eq.s32.totalorder %s1092_s14, 1  ;;  %p44_p2 = por %p43_p9, %p42_p7 }
  0x26   : > { %s345_s19 = sand.u32 1, %s1598_s11   ;;  %p1239_p6 = scmp.lt.s32.totalorder %s1602_s12, 2 }
  0x27   : > { %p1776_p4 = por %p246_p0, %p48_p10  ;;  %s1100_s25 = sshll.u32 %s345_s19, 3 }
  0x28   : > { %s1173_s27 = sshll.u32 %s1602_s12, 3  ;;  %s349_s29 = scalar_lea.vmem [#allocation2], %s1100_s25 }
  0x29   : > { %s354_s21 = scalar_lea.hbm %s1934_s0, %s1173_s27  ;;  %s357_s13 = sshll.u32 %s349_s29, 4  ;;  %s358_s13 = int_to_ptr.vmem [resolvable:$true] %s357_s13 }
  0x2a   : > { %s355_s24 = sshll.u32 %s354_s21, 4  ;;  %p1785_p8 = pnand %p1239_p6, %p44_p2  ;;  %s356_s24 = int_to_ptr.hbm [resolvable:$true] %s355_s24 }
  0x2b   : > { %s346_s1 = scalar_lea.sflag [#allocation3], %s345_s19  ;;  %s1494_s3 = sshra.s32 %s356_s24, 4  ;;  %s1495_s3 = int_to_ptr.hbm [resolvable:$true] %s1494_s3 }
  0x2c   : > { %s1496_s4 = scalar_lea.hbm %s1495_s3, 8  ;;  %p1498_p9 = pneg %p1785_p8 }
  0x2d   : > { %p1497_p7 = scmp.ne.s32.totalorder %s1495_s3, %s1496_s4  ;;  %s1501_s29 = scalar_lea.hbm %s1934_s0, 16 }
  0x2e   : > { %p1502_p0 = scmp.lt.s32.totalorder %s1495_s3, %s1934_s0  ;;  %p1503_p2 = scmp.lt.s32.totalorder %s1501_s29, %s1496_s4 }
  0x2f   : > { %p1499_p10 = pnand %p1498_p9, %p1497_p7 }
  0x30   : > { %p1504_p6 = por %p1503_p2, %p1502_p0 }
  0x31   : > { %p1500_p11 = pneg %p1499_p10 }
  0x33   : > { %p1505_p5 = pnand %p1504_p6, %p1500_p11 }
  0x35   : > { %1508 = shalt.err (!%p1505_p5)
}
  0x36   : > { %s1958_s19 = smov 4   ;;  %s1959_s21 = smov 64  }
  0x37   : > { %1229 = dma.hbm_to_vmem [thread:$0]  (!%p1785_p8), %s356_s24, 128, %s358_s13, %s346_s1, %s1959_s21, %s1959_s21, %s1958_s19  }
  0x38   : > { %369 = sbr.rel (%p1699_p3) target bundleno = 1442 (0x5a2), region = 56  ;;  %s1805_s27 = sand.u32 (!%p1699_p3), 1, %s1594_s10  }
  0x39   : > { %s1104_s3 = sshll.u32 (!%p1699_p3), %s1805_s27, 3  ;;  %s372_s4 = scalar_lea.sflag (!%p1699_p3), [#allocation3], %s1805_s27 }
  0x3a   : > { %s375_s26 = scalar_lea.vmem (!%p1699_p3), [#allocation2], %s1104_s3 }
  0x3d   : > { %1569 = dma.done.wait (%p1767_p12), %s372_s4, 128  }
  0x3e   : > { %1571 = vsyncadd (%p1767_p12), %s372_s4, 4294967168 }
  0x3f   : > { %1573 = dma.done.wait (%p49_p1), [#allocation6], 512  }
  0x40   : > { %1575 = vsyncadd (%p49_p1), [#allocation6], 4294966784 }
  0x41   : > { %1577 = dma.done.wait (%p49_p1), [#allocation9], 512  }
  0x42   : > { %1579 = vsyncadd (%p49_p1), [#allocation9], 4294966784 }
  0x43   : > { %1581 = dma.done.wait (%p49_p1), [#allocation12], 256  }
  0x44   : > { %1583 = vsyncadd (%p49_p1), [#allocation12], 4294967040  ;;  %v1176_v0 = vld [vmem:[#allocation5 + $0x8] sm:$0xff]  ;;  %v1175_v1 = vld [vmem:[#allocation5] sm:$0xff]  ;;  %vm464_vm0 = vcmask 261120   ;;  %s1611_s13 = smov 96  }
  0x45   : > { %474 = vmatpush.bf16.msra.mxu0 %v1176_v0  ;;  %v1174_v2 = vld [vmem:[%s375_s26] sm:$0xff]  ;;  %v1180_v5 = vld [vmem:[#allocation8 + $0x8] sm:$0xff]  ;;  %v1179_v6 = vld [vmem:[#allocation8] sm:$0xff]  ;;  %vm615_vm1 = vcmask 64512   ;;  %s1612_s14 = smov 112   ;;  %s1613_s29 = smov 104  }
  0x46   : > { %v1178_v3 = vld [vmem:[#allocation7 + $0x8] sm:$0xff]  ;;  %v1177_v4 = vld [vmem:[#allocation7] sm:$0xff]  ;;  %551 = vmatpush.bf16.msra.mxu2 %v1180_v5  ;;  %s1614_s25 = smov 120   ;;  %s1615_s28 = smov 64   ;;  %vm636_vm2 = vcmask 130048   ;;  %vm912_vm3 = vcmask 195584  }
  0x47   : > { %512 = vmatpush.bf16.msra.mxu1 %v1178_v3  ;;  %v1309_v8 = vld [vmem:[%s1936_s2] ss:$0 sm:$0xff]  ;;  %v1182_v37 = vld [vmem:[#allocation10 + $0x8] sm:$0xff]  ;;  %s1616_s19 = smov 8   ;;  %s1617_s21 = smov 24  }
  0x48   : > { %v1833_v13 = vld [vmem:[%s1940_s6] ss:$0 sm:$0xff]  ;;  %589 = vmatpush.bf16.msra.mxu3 %v1182_v37  ;;  %s1618_s3 = smov 16   ;;  %s1110_s4 = sshll.u32 %s1805_s27, 4 }
  0x49   : > { %475 = vmatpush.bf16.msra.mxu0 %v1175_v1  ;;  %v1181_v38 = vld [vmem:[#allocation10] sm:$0xff]  ;;  %s1185_s17 = sshll.u32 %s1694_s16, 4  ;;  %s1544_s26 = scalar_lea.hbm %s1943_s9, 32 }
  0x4a   : > { %552 = vmatpush.bf16.msra.mxu2 %v1179_v6 }
  0x4b   : > { %513 = vmatpush.bf16.msra.mxu1 %v1177_v4 }
  0x4c   : > { %1123 = vmatmul.msk.bf16.vlgmr.msra.gmra.mxu0 %vm464_vm0, %v1174_v2  ;;  %590 = vmatpush.bf16.msra.mxu3 %v1181_v38 }
  0xc9   : > { %v477_v7 = vpop.f32.mrf.mxu0 }
  0xca   : > { %v478_v10 = vadd.f32 %v1309_v8, %v477_v7 }
  0xd1   : > { %v479_v9 = vpop.f32.mrf.mxu0 }
  0xd2   : > { %v480_v11 = vadd.f32 %v1309_v8, %v479_v9 }
  0xd4   : > { %v482_v12 = vpack.c.bf16 %v480_v11, %v478_v10 }
  0xd6   : > { %525 = vrot.lane.b32.xlu0 %v482_v12, %s1611_s13  ;;  %1132 = vmatmul.msk.bf16.vlgmr.msra.gmra.mxu1 %vm464_vm0, %v482_v12 }
  0xde   : > { %539 = vrot.lane.b32.xlu0 %v1833_v13, %s1611_s13  ;;  %s435_s13 = scalar_lea.vmem [#allocation13], %s1110_s4 }
 0x148   : > { %v526_v14 = vpop.permute.xlu0 %525 }
 0x149   : > { %1141 = vmatmul.msk.bf16.vlgmr.msra.gmra.mxu2 %vm464_vm0, %v526_v14 }
 0x150   : > { %v540_v17 = vpop.permute.xlu0 %539 }
 0x153   : > { %v515_v15 = vpop.f32.mrf.mxu1 }
 0x154   : > { %v516_v22 = vadd.f32 %v1833_v13, %v515_v15 }
 0x156   : > { %v597_v27 = vmul.f32 0.35355338, %v516_v22 }
 0x158   : > { %v599_v32 = vpack.c.bf16 %v597_v27, %v597_v27 }
 0x15a   : > { %v607_v35 = vunpack.c.l.b16 %v599_v32 }
 0x15b   : > { %v517_v18 = vpop.f32.mrf.mxu1 }
 0x15c   : > { %v518_v20 = vadd.f32 %v1833_v13, %v517_v18 }
 0x15e   : > { %v598_v25 = vmul.f32 0.35355338, %v518_v20 }
 0x160   : > { %v600_v30 = vpack.c.bf16 %v598_v25, %v598_v25 }
 0x162   : > { %v608_v34 = vunpack.c.l.b16 %v600_v30 }
 0x164   : > { %v609_v36 = vpack.c.b16 %v608_v34, %v607_v35 }
 0x1cc   : > { %v554_v16 = vpop.f32.mrf.mxu2 }
 0x1cd   : > { %v555_v19 = vadd.f32 %v554_v16, %v540_v17 }
 0x1cf   : > { %v601_v23 = vpack.c.bf16 %v555_v19, %v555_v19 }
 0x1d1   : > { %v612_v28 = vunpack.c.l.b16 %v601_v23 }
 0x1d4   : > { %v556_v21 = vpop.f32.mrf.mxu2 }
 0x1d5   : > { %v557_v24 = vadd.f32 %v556_v21, %v540_v17 }
 0x1d7   : > { %v602_v26 = vpack.c.bf16 %v557_v24, %v557_v24 }
 0x1d9   : > { %v613_v29 = vunpack.c.l.b16 %v602_v26 }
 0x1db   : > { %v614_v31 = vpack.c.b16 %v613_v29, %v612_v28 }
 0x1dd   : > { %752 = vrot.lane.b32.xlu0 %v614_v31, %s1612_s14  ;;  %819 = vrot.lane.b32.xlu2 %v614_v31, %s1613_s29  ;;  %v620_v33 = vsel %vm615_vm1, %v614_v31, 0 }
 0x1de   : > { %685 = vrot.lane.b32.xlu1 %v614_v31, %s1614_s25  ;;  %629 = vmatpush.bf16.xpose.msrb.mxu0 %v620_v33 }
 0x1e5   : > { %817 = vrot.lane.b32.xlu2 %v609_v36, %s1613_s29  ;;  %1151 = vmatmul.msk.bf16.vlgmr.msrb.gmra.mxu0 %vm615_vm1, %v609_v36 }
 0x1e6   : > { %683 = vrot.lane.b32.xlu1 %v609_v36, %s1614_s25 }
 0x1ed   : > { %563 = vrot.lane.b32.xlu2 %v482_v12, %s1615_s28 }
 0x1ee   : > { %750 = vrot.lane.b32.xlu1 %v609_v36, %s1612_s14 }
 0x237   : > { %v820_v39 = vpop.permute.xlu2 %819 }
 0x238   : > { %v825_v46 = vsel %vm615_vm1, %v820_v39, 0 }
 0x23f   : > { %v818_v40 = vpop.permute.xlu2 %817 }
 0x247   : > { %v564_v41 = vpop.permute.xlu2 %563 }
 0x248   : > { %1150 = vmatmul.msk.bf16.vlgmr.msra.gmra.mxu3 %vm464_vm0, %v564_v41 }
 0x24f   : > { %v753_v42 = vpop.permute.xlu0 %752 }
 0x250   : > { %v758_v43 = vsel %vm615_vm1, %v753_v42, 0  ;;  %v686_v44 = vpop.permute.xlu1 %685 }
 0x251   : > { %v691_v45 = vsel %vm615_vm1, %v686_v44, 0  ;;  %767 = vmatpush.bf16.xpose.msra.mxu0 %v758_v43 }
 0x252   : > { %700 = vmatpush.bf16.xpose.msrb.mxu2 %v691_v45 }
 0x258   : > { %v684_v47 = vpop.permute.xlu1 %683 }
 0x259   : > { %1153 = vmatmul.msk.bf16.vlgmr.msrb.gmra.mxu2 %vm615_vm1, %v684_v47 }
 0x25a   : > { %834 = vmatpush.bf16.xpose.msra.mxu2 %v825_v46 }
 0x260   : > { %v751_v48 = vpop.permute.xlu1 %750 }
 0x261   : > { %1155 = vmatmul.msk.bf16.vlgmr.msra.gmra.mxu0 %vm615_vm1, %v751_v48 }
 0x262   : > { %v631_v49 = vpop.f32.mrf.mxu0 }
 0x263   : > { %v637_v50 = vsel %vm636_vm2, %v631_v49, -inf }
 0x264   : > { %638 = vmax.xlane.f32.xlu2 %v637_v50 }
 0x269   : > { %1157 = vmatmul.msk.bf16.vlgmr.msra.gmra.mxu2 %vm615_vm1, %v818_v40 }
 0x26a   : > { %v633_v51 = vpop.f32.mrf.mxu0 }
 0x26b   : > { %v640_v52 = vsel %vm636_vm2, %v633_v51, -inf }
 0x26c   : > { %641 = vmax.xlane.f32.xlu2 %v640_v52 }
 0x2cb   : > { %v592_v17 = vpop.f32.mrf.mxu3 }
 0x2d3   : > { %v594_v27 = vpop.f32.mrf.mxu3 }
 0x2d7   : > { %v639_v53 = vpop.xlane.xlu2 %638 }
 0x2d8   : > { %v643_v55 = vsub.f32 %v631_v49, %v639_v53 }
 0x2da   : > { %v645_v61 = vmul.f32 1.442695, %v643_v55 }
 0x2dc   : > { %v702_v54 = vpop.f32.mrf.mxu2  ;;  %1312 = vpow2.f32 %v645_v61 }
 0x2dd   : > { %v707_v56 = vsel %vm636_vm2, %v702_v54, -inf }
 0x2de   : > { %708 = vmax.xlane.f32.xlu0 %v707_v56  ;;  %v769_v57 = vpop.f32.mrf.mxu0 }
 0x2df   : > { %v774_v58 = vsel %vm636_vm2, %v769_v57, -inf  ;;  %v642_v59 = vpop.xlane.xlu2 %641 }
 0x2e0   : > { %775 = vmax.xlane.f32.xlu1 %v774_v58  ;;  %v644_v60 = vsub.f32 %v633_v51, %v642_v59 }
 0x2e2   : > { %v647_v62 = vmul.f32 1.442695, %v644_v60  ;;  %v1313_v3 = vpop.eup %1312 }
 0x2e3   : > { %v649_v6 = vsel %vm636_vm2, %v1313_v3, 0.0 }
 0x2e4   : > { %v704_v63 = vpop.f32.mrf.mxu2  ;;  %1314 = vpow2.f32 %v647_v62 }
 0x2e5   : > { %v710_v1 = vsel %vm636_vm2, %v704_v63, -inf }
 0x2e6   : > { %v1859_v0 = vpop.f32.mrf.mxu0 }
 0x2e7   : > { %v777_v2 = vsel %vm636_vm2, %v1859_v0, -inf }
 0x2e8   : > { %711 = vmax.xlane.f32.xlu1 %v710_v1  ;;  %778 = vmax.xlane.f32.xlu2 %v777_v2 }
 0x2ea   : > { %v1315_v4 = vpop.eup %1314 }
 0x2eb   : > { %v652_v7 = vsel %vm636_vm2, %v1315_v4, 0.0 }
 0x2ec   : > { %v836_v5 = vpop.f32.mrf.mxu2 }
 0x2ed   : > { %v841_v10 = vsel %vm636_vm2, %v836_v5, -inf }
 0x2f0   : > { %650 = vadd.xlane.f32.xlu2 %v649_v6  ;;  %653 = vadd.xlane.f32.xlu1 %v652_v7 }
 0x2f2   : > { %577 = vrot.lane.b32.xlu0 %v1833_v13, %s1615_s28  ;;  %s956_s28 = scalar_lea.sflag [#allocation4], %s1805_s27 }
 0x2f4   : > { %v838_v8 = vpop.f32.mrf.mxu2 }
 0x2f5   : > { %v844_v9 = vsel %vm636_vm2, %v838_v8, -inf }
 0x2f8   : > { %845 = vmax.xlane.f32.xlu2 %v844_v9  ;;  %842 = vmax.xlane.f32.xlu1 %v841_v10 }
 0x351   : > { %v709_v11 = vpop.xlane.xlu0 %708 }
 0x352   : > { %v713_v15 = vsub.f32 %v702_v54, %v709_v11 }
 0x353   : > { %v776_v12 = vpop.xlane.xlu1 %775 }
 0x354   : > { %v780_v14 = vsub.f32 %v769_v57, %v776_v12  ;;  %v715_v18 = vmul.f32 1.442695, %v713_v15 }
 0x356   : > { %v782_v16 = vmul.f32 1.442695, %v780_v14 }
 0x358   : > { %1316 = vpow2.f32 %v782_v16 }
 0x359   : > { %1318 = vpow2.f32 %v715_v18 }
 0x35b   : > { %v712_v19 = vpop.xlane.xlu1 %711  ;;  %v779_v20 = vpop.xlane.xlu2 %778 }
 0x35c   : > { %v714_v21 = vsub.f32 %v704_v63, %v712_v19  ;;  %v781_v54 = vsub.f32 %v1859_v0, %v779_v20 }
 0x35e   : > { %v1870_v22 = vpop.eup %1316  ;;  %v717_v13 = vmul.f32 1.442695, %v714_v21  ;;  %v784_v55 = vmul.f32 1.442695, %v781_v54 }
 0x35f   : > { %v786_v23 = vsel %vm636_vm2, %v1870_v22, 0.0  ;;  %v1319_v26 = vpop.eup %1318 }
 0x360   : > { %1320 = vpow2.f32 %v717_v13  ;;  %787 = vadd.xlane.f32.xlu1 %v786_v23  ;;  %v719_v35 = vsel %vm636_vm2, %v1319_v26, 0.0 }
 0x363   : > { %v654_v24 = vpop.xlane.xlu1 %653  ;;  %v651_v25 = vpop.xlane.xlu2 %650 }
 0x364   : > { %1322 = vrcp.f32 %v654_v24  ;;  %v578_v28 = vpop.permute.xlu0 %577 }
 0x365   : > { %1324 = vrcp.f32 %v651_v25  ;;  %v593_v29 = vadd.f32 %v592_v17, %v578_v28  ;;  %v595_v30 = vadd.f32 %v594_v27, %v578_v28 }
 0x366   : > { %v1321_v31 = vpop.eup %1320 }
 0x367   : > { %v603_v32 = vpack.c.bf16 %v593_v29, %v593_v29  ;;  %v604_v33 = vpack.c.bf16 %v595_v30, %v595_v30  ;;  %v722_v34 = vsel %vm636_vm2, %v1321_v31, 0.0  ;;  %v1183_v30 = vld [vmem:[#allocation11] sm:$0xff] }
 0x368   : > { %723 = vadd.xlane.f32.xlu0 %v722_v34  ;;  %720 = vadd.xlane.f32.xlu1 %v719_v35 }
 0x369   : > { %v662_v36 = vunpack.c.l.b16 %v603_v32  ;;  %v663_v37 = vunpack.c.l.b16 %v604_v33 }
 0x36a   : > { %v1323_v38 = vpop.eup %1322 }
 0x36b   : > { %v1325_v39 = vpop.eup %1324  ;;  %v658_v40 = vmul.f32 %v1323_v38, %v1315_v4  ;;  %v664_v41 = vpack.c.b16 %v663_v37, %v662_v36  ;;  %v843_v42 = vpop.xlane.xlu1 %842 }
 0x36c   : > { %v846_v43 = vpop.xlane.xlu2 %845  ;;  %v657_v44 = vmul.f32 %v1325_v39, %v1313_v3  ;;  %v847_v45 = vsub.f32 %v836_v5, %v843_v42 }
 0x36d   : > { %676 = vmatpush.bf16.msrb.mxu1 %v664_v41  ;;  %730 = vrot.lane.b32.xlu2 %v664_v41, %s1614_s25  ;;  %v848_v47 = vsub.f32 %v838_v8, %v846_v43 }
 0x36e   : > { %v849_v46 = vmul.f32 1.442695, %v847_v45  ;;  %v659_v48 = vpack.c.bf16 %v658_v40, %v657_v44 }
 0x36f   : > { %v851_v49 = vmul.f32 1.442695, %v848_v47  ;;  %v1311_v47 = vld [vmem:[%s1942_s8] ss:$0 sm:$0xff] }
 0x370   : > { %1326 = vpow2.f32 %v849_v46  ;;  %1152 = vmatmul.msk.bf16.vlgmr.msrb.gmra.mxu1 %vm636_vm2, %v659_v48 }
 0x371   : > { %1328 = vpow2.f32 %v851_v49 }
 0x372   : > { %1330 = vpow2.f32 %v784_v55 }
 0x376   : > { %v1327_v50 = vpop.eup %1326 }
 0x377   : > { %v853_v51 = vsel %vm636_vm2, %v1327_v50, 0.0  ;;  %v1329_v52 = vpop.eup %1328 }
 0x378   : > { %854 = vadd.xlane.f32.xlu1 %v853_v51  ;;  %v856_v53 = vsel %vm636_vm2, %v1329_v52, 0.0  ;;  %v1331_v56 = vpop.eup %1330 }
 0x379   : > { %v789_v57 = vsel %vm636_vm2, %v1331_v56, 0.0 }
 0x37c   : > { %797 = vrot.lane.b32.xlu0 %v664_v41, %s1612_s14  ;;  %s967_s14 = scalar_lea.hbm %s1943_s9, %s1185_s17 }
 0x37d   : > { %s970_s25 = sshll.u32 %s967_s14, 4  ;;  %s971_s25 = int_to_ptr.hbm [resolvable:$true] %s970_s25 }
 0x380   : > { %857 = vadd.xlane.f32.xlu1 %v856_v53 }
 0x396   : > { %790 = vadd.xlane.f32.xlu2 %v789_v57 }
 0x399   : > { %864 = vrot.lane.b32.xlu1 %v664_v41, %s1613_s29  ;;  %s968_s29 = sshll.u32 %s435_s13, 4  ;;  %s969_s29 = int_to_ptr.vmem [resolvable:$true] %s968_s29 }
 0x3c7   : > { %v731_v58 = vpop.permute.xlu2 %730 }
 0x3c8   : > { %743 = vmatpush.bf16.msrb.mxu3 %v731_v58 }
 0x3d3   : > { %v788_v59 = vpop.xlane.xlu1 %787 }
 0x3db   : > { %v724_v60 = vpop.xlane.xlu0 %723  ;;  %v721_v61 = vpop.xlane.xlu1 %720 }
 0x3dc   : > { %1332 = vrcp.f32 %v724_v60 }
 0x3dd   : > { %1334 = vrcp.f32 %v721_v61 }
 0x3e2   : > { %v1333_v62 = vpop.eup %1332 }
 0x3e3   : > { %v1335_v63 = vpop.eup %1334  ;;  %v728_v1 = vmul.f32 %v1333_v62, %v1321_v31 }
 0x3e4   : > { %v727_v2 = vmul.f32 %v1335_v63, %v1319_v26 }
 0x3e6   : > { %v729_v0 = vpack.c.bf16 %v728_v1, %v727_v2 }
 0x3e8   : > { %1154 = vmatmul.msk.bf16.vlgmr.msrb.gmra.mxu3 %vm636_vm2, %v729_v0 }
 0x3eb   : > { %v855_v4 = vpop.xlane.xlu1 %854 }
 0x3ed   : > { %v678_v13 = vpop.f32.mrf.mxu1 }
 0x3ee   : > { %v798_v3 = vpop.permute.xlu0 %797 }
 0x3ef   : > { %810 = vmatpush.bf16.msra.mxu1 %v798_v3 }
 0x3f3   : > { %v858_v5 = vpop.xlane.xlu1 %857 }
 0x3f4   : > { %1336 = vrcp.f32 %v858_v5 }
 0x3f5   : > { %1338 = vrcp.f32 %v855_v4  ;;  %v680_v23 = vpop.f32.mrf.mxu1 }
 0x3f6   : > { %1340 = vrcp.f32 %v788_v59 }
 0x3fa   : > { %v1337_v6 = vpop.eup %1336 }
 0x3fb   : > { %v1339_v7 = vpop.eup %1338  ;;  %v862_v8 = vmul.f32 %v1337_v6, %v1329_v52 }
 0x3fc   : > { %v861_v10 = vmul.f32 %v1339_v7, %v1327_v50  ;;  %v1341_v14 = vpop.eup %1340 }
 0x3fd   : > { %v794_v16 = vmul.f32 %v1341_v14, %v1870_v22  ;;  %v1184_v22 = vld [vmem:[#allocation11 + $0x8] sm:$0xff] }
 0x3fe   : > { %v863_v12 = vpack.c.bf16 %v862_v8, %v861_v10  ;;  %945 = vmatpush.bf16.msrb.mxu0 %v1184_v22 }
 0x402   : > { %946 = vmatpush.bf16.msrb.mxu0 %v1183_v30 }
 0x409   : > { %v791_v9 = vpop.xlane.xlu2 %790 }
 0x40a   : > { %1342 = vrcp.f32 %v791_v9 }
 0x40b   : > { %v865_v11 = vpop.permute.xlu1 %864 }
 0x40c   : > { %877 = vmatpush.bf16.msra.mxu3 %v865_v11 }
 0x40f   : > { %1158 = vmatmul.msk.bf16.vlgmr.msra.gmra.mxu3 %vm636_vm2, %v863_v12 }
 0x410   : > { %v1343_v15 = vpop.eup %1342 }
 0x411   : > { %v795_v17 = vmul.f32 %v1343_v15, %v1331_v56 }
 0x413   : > { %v796_v18 = vpack.c.bf16 %v795_v17, %v794_v16 }
 0x415   : > { %1156 = vmatmul.msk.bf16.vlgmr.msra.gmra.mxu1 %vm636_vm2, %v796_v18 }
 0x46b   : > { %v745_v19 = vpop.f32.mrf.mxu3 }
 0x473   : > { %v747_v20 = vpop.f32.mrf.mxu3 }
 0x474   : > { %v1294_v21 = vpack.i.bf16 %v747_v20, %v745_v19 }
 0x476   : > { %1295 = vrot.lane.b32.xlu1 %v1294_v21, %s1616_s19 }
 0x492   : > { %v812_v24 = vpop.f32.mrf.mxu1  ;;  %v879_v25 = vpop.f32.mrf.mxu3 }
 0x49a   : > { %v814_v26 = vpop.f32.mrf.mxu1  ;;  %v881_v27 = vpop.f32.mrf.mxu3 }
 0x49b   : > { %v1299_v28 = vpack.i.bf16 %v814_v26, %v812_v24  ;;  %v1304_v29 = vpack.i.bf16 %v881_v27, %v879_v25 }
 0x49d   : > { %1305 = vrot.lane.b32.xlu1 %v1304_v29, %s1617_s21  ;;  %1300 = vrot.lane.b32.xlu0 %v1299_v28, %s1618_s3  ;;  %s1538_s21 = sshra.s32 %s971_s25, 4  ;;  %s1539_s21 = int_to_ptr.hbm [resolvable:$true] %s1538_s21 }
 0x49e   : > { %s1540_s16 = scalar_lea.hbm %s1539_s21, 16  ;;  %p1545_p12 = scmp.lt.s32.totalorder %s1539_s21, %s1943_s9 }
 0x49f   : > { %p1541_p1 = scmp.ne.s32.totalorder %s1539_s21, %s1540_s16  ;;  %p1546_p8 = scmp.lt.s32.totalorder %s1544_s26, %s1540_s16 }
 0x4a1   : > { %p1542_p3 = pnand %p1541_p1, %p1771_p13  ;;  %p1547_p7 = por %p1546_p8, %p1545_p12 }
 0x4a3   : > { %p1543_p5 = pneg %p1542_p3 }
 0x4a5   : > { %p1548_p9 = pnand %p1547_p7, %p1543_p5 }
 0x4e8   : > { %v1296_v31 = vpop.permute.xlu1 %1295 }
 0x4e9   : > { %v1298_v32 = vunpack.i.h.bf16 %v1296_v31  ;;  %v1297_v33 = vunpack.i.l.bf16 %v1296_v31 }
 0x4eb   : > { %v909_v40 = vsel %vm615_vm1, %v680_v23, %v1298_v32  ;;  %v908_v41 = vsel %vm615_vm1, %v678_v13, %v1297_v33 }
 0x50f   : > { %v1306_v34 = vpop.permute.xlu1 %1305  ;;  %v1301_v35 = vpop.permute.xlu0 %1300 }
 0x510   : > { %v1308_v36 = vunpack.i.h.bf16 %v1306_v34  ;;  %v1307_v37 = vunpack.i.l.bf16 %v1306_v34  ;;  %v1303_v38 = vunpack.i.h.bf16 %v1301_v35  ;;  %v1302_v39 = vunpack.i.l.bf16 %v1301_v35 }
 0x512   : > { %v911_v42 = vsel %vm636_vm2, %v909_v40, %v1303_v38  ;;  %v910_v43 = vsel %vm636_vm2, %v908_v41, %v1302_v39 }
 0x513   : > { %v914_v44 = vsel %vm912_vm3, %v911_v42, %v1308_v36  ;;  %v913_v45 = vsel %vm912_vm3, %v910_v43, %v1307_v37 }
 0x514   : > { %v915_v46 = vpack.c.bf16 %v914_v44, %v913_v45 }
 0x516   : > { %1167 = vmatmul.msk.bf16.vlgmr.msrb.gmra.mxu0 %vm464_vm0, %v915_v46 }
 0x593   : > { %v948_v48 = vpop.f32.mrf.mxu0 }
 0x594   : > { %v949_v49 = vadd.f32 %v1311_v47, %v948_v48 }
 0x596   : > { %953 = vst.msk [vmem:[%s435_s13] sm:$0xff] %vm464_vm0, %v949_v49 }
 0x59b   : > { %v950_v50 = vpop.f32.mrf.mxu0 }
 0x59c   : > { %v951_v51 = vadd.f32 %v1311_v47, %v950_v50 }
 0x59e   : > { %954 = vst.msk [vmem:[%s435_s13 + $0x8] sm:$0xff] %vm464_vm0, %v951_v51 }
 0x59f   : > { %1551 = shalt.err (!%p1548_p9)
}
 0x5a0   : > { %s1619_s27 = smov 128  }
 0x5a1   : > { %1208 = dma.vmem_to_hbm [thread:$0]  (%p1771_p13), %s969_s29, 256, %s971_s25, %s956_s28, %s1619_s27, %s1619_s27, %s1616_s19  }
 0x5a2 PF: > { %s985_s13 = sand.u32 1, %s1590_s30   ;;  %p1960_p10 = scmp.ge.s32.totalorder %s1602_s12, 2 }
 0x5a3   : > { %s986_s23 = scalar_lea.sflag [#allocation4], %s985_s13 }
 0x5a4   : > { %p1231_p11 = pnand %p1960_p10, %p1776_p4 }
 0x5a6   : > { %p1232_p0 = pneg %p1231_p11 }
 0x5a8   : > { %1585 = dma.done.wait (%p1232_p0), %s986_s23, 256  }
 0x5a9   : > { %1587 = vsyncadd (%p1232_p0), %s986_s23, 4294967040  ;;  %p25_p2 = scmp.ge.s32.totalorder %s1751_s18, 4   ;;  %s1961_s30 = smov %s1594_s10 }
 0x5aa   : > { %s1962_s10 = smov %s1598_s11  ;;  %s1963_s11 = smov %s1763_s20 }
 0x5ab   : > { %s1964_s12 = smov %s1751_s18  ;;  %27 = sbr.rel (!%p25_p2) target bundleno = 12 (0xc), region = 121 }
 0x5b0   :  { %992 = vsyncpa [#allocation3], 1 }
 0x5b1   :  { %994 = vsyncpa [#allocation3 + $0x1], 1 }
 0x5b2   :  { %995 = vsyncpa [#allocation6], 1 }
 0x5b3   :  { %996 = vsyncpa [#allocation9], 1 }
 0x5b4   :  { %997 = vsyncpa [#allocation12], 1 }
 0x5b5   :  { %998 = vsyncpa [#allocation4], 1 }
 0x5b6   :  { %1000 = vsyncpa [#allocation4 + $0x1], 1 }

</bundles_post_ra>
